<compile_context>
chip_gen: v6e
topology: v6e:2x2x1
jax: 0.10.0
libtpu: 0.0.40
codegen_flags: <defaults>
</compile_context>

<pallas_src>
import math
import functools

import jax
import jax.numpy as jnp
from jax.experimental import pallas as pl
from jax.experimental.pallas import tpu as pltpu

LANE = 128
TM_CAP = 512                         # adjacency row-tile cap (output rows / step)
TK_CAP = 1024                        # adjacency contraction-tile cap (last grid axis)
X_RESIDENT_BYTES = 4 * 1024 * 1024   # keep x fully VMEM-resident below this size

# 32 MiB scoped VMEM: above v5e's 16 MiB default; together with the few-MiB
# double-buffered tiles used here this stays well inside v7x's 64 MiB physical
# VMEM (review: keep total budget ~<= 48-56 MiB on v7x).
_COMPILER_PARAMS = pltpu.CompilerParams(
    dimension_semantics=("parallel", "arbitrary"),
    vmem_limit_bytes=32 * 1024 * 1024,
)


def _round_up(x, m):
    return ((x + m - 1) // m) * m


def _choose_row_tile(dim, cap):
    """Largest multiple of 128 <= min(cap, dim) that pads `dim` by at most 128.

    `dim` is already a multiple of 128.  Capping padding at one 128 tile keeps
    bigger tiles from inflating HBM bytes on this bandwidth-bound kernel.
    """
    best = LANE
    t = LANE
    limit = min(cap, dim)
    while t <= limit:
        if _round_up(dim, t) - dim <= LANE:
            best = t
        t += LANE
    return best


def _choose_tiles(np_base):
    """Pick (tm, tk, np_pad) for the (np, np) adjacency."""
    # Cap tm at np/2 so the "parallel" row axis keeps >= 2 grid points and both
    # v7x TensorCores get work (harmless on single-TC v5e/v6e).
    tm_cap = min(TM_CAP, max(LANE, ((np_base // 2) // LANE) * LANE))
    tm = _choose_row_tile(np_base, tm_cap)
    # tk is a multiple of tm so np_pad (a multiple of tk) is automatically a
    # multiple of tm too; grow it while padding stays <= one 128 tile.
    tk = tm
    m = 2
    while m * tm <= min(TK_CAP, np_base):
        if _round_up(np_base, m * tm) - np_base <= LANE:
            tk = m * tm
        m += 1
    np_pad = _round_up(np_base, tk)
    return tm, tk, np_pad


# --------------------------------------------------------------------------
# Fused layer kernel: out = act((adj @ x) @ W + b)
# grid = (adjacency row tiles, node-contraction tiles)   [reduction axis last]
# --------------------------------------------------------------------------
def _epilogue(acc, w_ref, b_ref, o_ref, negative_slope):
    """Project the accumulated (adj @ x) through W, add bias, optional LeakyReLU."""
    h = jnp.dot(acc, w_ref[...], preferred_element_type=jnp.float32) + b_ref[...]
    if negative_slope is not None:
        h = jnp.where(h > 0, h, negative_slope * h)
    o_ref[...] = h.astype(o_ref.dtype)


def _gcn_layer_kernel(adj_ref, x_ref, w_ref, b_ref, o_ref, *acc_scratch,
                      tk, x_resident, negative_slope):
    k = pl.program_id(1)

    if x_resident and x_ref.shape[0] != tk:
        # x is fully VMEM-resident (fetched once); slice the current k window.
        start = pl.multiple_of(k * tk, LANE)
        x_blk = x_ref[pl.ds(start, tk), :]
    else:
        x_blk = x_ref[...]

    part = jnp.dot(adj_ref[...], x_blk, preferred_element_type=jnp.float32)

    if not acc_scratch:
        # Single contraction step: no accumulator round trip, fuse the epilogue.
        _epilogue(part, w_ref, b_ref, o_ref, negative_slope)
        return

    acc_ref, = acc_scratch

    @pl.when(k == 0)
    def _():
        acc_ref[...] = part          # init with first partial product (no zero fill)

    @pl.when(k != 0)
    def _():
        acc_ref[...] += part

    @pl.when(k == pl.num_programs(1) - 1)
    def _():
        _epilogue(acc_ref[...], w_ref, b_ref, o_ref, negative_slope)


def gcn_layer(x_p, adj_p, w, b, *, tm, tk, np_pad, apply_leaky_relu, out_dtype):
    """One fused GraphConvolution layer: out = act((adj @ x) @ W + b).

    x_p:   (np_pad, finp)   bf16 activations, rows/cols zero-padded
    adj_p: (np_pad, np_pad) bf16 zero-padded adjacency
    w:     (fin, fout) f32, b: (fout,) f32   (unpadded)
    Returns padded activations of shape (np_pad, round_up(fout, 128)) in out_dtype.
    """
    fin, fout = w.shape
    finp = _round_up(fin, LANE)
    foutp = _round_up(fout, LANE)
    assert x_p.shape == (np_pad, finp), (x_p.shape, np_pad, finp)

    # Zero-pad params.  W/b stay f32: tiny, fetched once (constant block index),
    # and an f32 epilogue matmul avoids an extra bf16 rounding of (adj @ x).
    w_p = jnp.pad(w, ((0, finp - fin), (0, foutp - fout)))
    b_p = jnp.pad(b, (0, foutp - fout)).reshape(1, foutp)

    nk = np_pad // tk
    x_resident = (np_pad * finp * x_p.dtype.itemsize) <= X_RESIDENT_BYTES
    if x_resident:
        # Whole activation matrix stays in VMEM; only adj streams per grid step.
        x_spec = pl.BlockSpec((np_pad, finp), lambda i, k: (0, 0))
    else:
        x_spec = pl.BlockSpec((tk, finp), lambda i, k: (k, 0))

    kernel = functools.partial(
        _gcn_layer_kernel,
        tk=tk,
        x_resident=x_resident,
        negative_slope=0.2 if apply_leaky_relu else None,
    )

    return pl.pallas_call(
        kernel,
        out_shape=jax.ShapeDtypeStruct((np_pad, foutp), out_dtype),
        grid_spec=pltpu.PrefetchScalarGridSpec(
            num_scalar_prefetch=0,
            grid=(np_pad // tm, nk),
            in_specs=[
                # adj: dominant HBM stream, tiled over (row, contraction).
                # TODO(synk): if adj DMA is still exposed in a profile, add
                # pipeline_mode=pl.Buffered(3) on this spec only.
                pl.BlockSpec((tm, tk), lambda i, k: (i, k)),
                x_spec,
                pl.BlockSpec((finp, foutp), lambda i, k: (0, 0)),   # W (epilogue)
                pl.BlockSpec((1, foutp), lambda i, k: (0, 0)),      # bias
            ],
            out_specs=pl.BlockSpec((tm, foutp), lambda i, k: (i, 0)),
            scratch_shapes=(
                [] if nk == 1 else [pltpu.VMEM((tm, finp), jnp.float32)]
            ),
        ),
        compiler_params=_COMPILER_PARAMS,
    )(adj_p, x_p, w_p, b_p)


def init_gcn_params(key, ninput, nhid, noutput):
    """Deterministic init mirroring GraphConvolution.reset_parameters()."""
    channels = [ninput] + list(nhid) + [noutput]
    params = []
    for i in range(len(channels) - 1):
        fin, fout = channels[i], channels[i + 1]
        stdv = 1.0 / math.sqrt(fout)
        key, kw, kb = jax.random.split(key, 3)
        w = jax.random.uniform(kw, (fin, fout), jnp.float32, minval=-stdv, maxval=stdv)
        b = jax.random.uniform(kb, (fout,), jnp.float32, minval=-stdv, maxval=stdv)
        params.append((w, b))
    return params


def gcn_forward(x, adj, params, dropout_rate):
    """GCN.forward: hidden layers + LeakyReLU, dropout (eval -> identity), final layer."""
    n = x.shape[0]
    np_base = _round_up(n, LANE)
    tm, tk, np_pad = _choose_tiles(np_base)

    # Invariant relied on throughout: adj's padded rows/columns are ZERO.  Padded
    # activation rows (node index >= n) accumulate bias(+LeakyReLU) garbage
    # between layers, but adj's zero padded columns guarantee they never leak
    # into real rows; activation padded columns stay exactly zero because W and
    # b are zero-padded.
    adj_p = jnp.pad(adj, ((0, np_pad - n), (0, np_pad - n))).astype(jnp.bfloat16)

    fin0 = params[0][0].shape[0]
    assert x.shape[1] == fin0, (x.shape, fin0)
    x_p = jnp.pad(
        x, ((0, np_pad - n), (0, _round_up(fin0, LANE) - fin0))
    ).astype(jnp.bfloat16)

    n_layers = len(params)
    for li, (w, b) in enumerate(params):
        last = li == n_layers - 1
        # F.dropout(x, p, training=self.training): inference mode -> identity.
        # TODO(synk): stochastic dropout for training mode (pltpu.prng_*) not wired in.
        x_p = gcn_layer(
            x_p, adj_p, w, b,
            tm=tm, tk=tk, np_pad=np_pad,
            apply_leaky_relu=not last,
            out_dtype=jnp.float32 if last else jnp.bfloat16,
        )
    del dropout_rate

    # TODO(synk): for graphs where np_pad^2 * 2B fits the per-generation VMEM
    # budget (~<= 4k nodes on v7x's 64 MiB), fuse the whole layer stack into a
    # single pallas_call with adj VMEM-resident to cut its HBM reads from L to 1.
    # TODO(synk): int8 (v5e/v6e) / fp8 (v7x) quantized adjacency would halve the
    # dominant HBM stream; needs accuracy validation against the f32 reference.
    fout = params[-1][0].shape[1]
    return x_p[:n, :fout]


def _gcn_reference(x, adj, params):
    """Pure-JAX f32 reference of the torch forward (eval mode)."""
    h = x
    for (w, b) in params[:-1]:
        h = adj @ (h @ w) + b
        h = jnp.where(h > 0, h, 0.2 * h)
    w, b = params[-1]
    return adj @ (h @ w) + b


if __name__ == "__main__":
    key = jax.random.PRNGKey(0)

    # Small, forward-consistent shapes: N nodes, feature dims per layer.
    N = 8
    ninput, nhid, noutput = 32, [32, 16], 8
    dropout = 0.5

    key, kx, ka, kp = jax.random.split(key, 4)
    x = jax.random.normal(kx, (N, ninput), jnp.float32)

    # Symmetric row-normalized adjacency with self-loops (dense).
    a_raw = (jax.random.uniform(ka, (N, N)) > 0.6).astype(jnp.float32)
    a_sym = jnp.clip(a_raw + a_raw.T, 0.0, 1.0) + jnp.eye(N, dtype=jnp.float32)
    adj = a_sym / jnp.sum(a_sym, axis=1, keepdims=True)

    params = init_gcn_params(kp, ninput, nhid, noutput)

    out = gcn_forward(x, adj, params, dropout)
    jax.block_until_ready(out)
    assert out.shape == (N, noutput), out.shape

    ref = _gcn_reference(x, adj, params)
    assert jnp.all(jnp.isfinite(out))
    # bf16-streamed adj/x with f32 accumulation and f32 W epilogue vs f32 reference.
    err = float(jnp.max(jnp.abs(out - ref)))
    assert jnp.allclose(out, ref, rtol=5e-2, atol=5e-2), err

    print("KERNEL_OK")
</pallas_src>

<mosaic_0001>
module attributes {stable_mosaic.version = 11 : i64} {
  func.func @_gcn_layer_kernel(%arg0: i32, %arg1: i32, %arg2: memref<128x128xbf16, #tpu.memory_space<vmem>>, %arg3: memref<128x128xbf16, #tpu.memory_space<vmem>>, %arg4: memref<128x128xf32, #tpu.memory_space<vmem>>, %arg5: memref<1x128xf32, #tpu.memory_space<vmem>>, %arg6: memref<128x128xbf16, #tpu.memory_space<vmem>>) attributes {dimension_semantics = [#tpu.dimension_semantics<parallel>, #tpu.dimension_semantics<arbitrary>], iteration_bounds = array<i64: 1, 1>, scalar_prefetch = 0 : i64, scratch_operands = 0 : i64, tpu.core_type = #tpu.core_type<tc>, window_params = [{transform_indices = @transform_0, window_bounds = array<i64: 128, 128>}, {pipeline_mode = #tpu.pipeline_mode<synchronous>, transform_indices = @transform_1, window_bounds = array<i64: 128, 128>}, {pipeline_mode = #tpu.pipeline_mode<synchronous>, transform_indices = @transform_2, window_bounds = array<i64: 128, 128>}, {pipeline_mode = #tpu.pipeline_mode<synchronous>, transform_indices = @transform_3, window_bounds = array<i64: 1, 128>}, {transform_indices = @transform_4, window_bounds = array<i64: 128, 128>}]} {
    %c0 = arith.constant 0 : index
    %c0_0 = arith.constant 0 : index
    %0 = vector.load %arg3[%c0, %c0_0] : memref<128x128xbf16, #tpu.memory_space<vmem>>, vector<128x128xbf16>
    %c0_1 = arith.constant 0 : index
    %c0_2 = arith.constant 0 : index
    %1 = vector.load %arg2[%c0_1, %c0_2] : memref<128x128xbf16, #tpu.memory_space<vmem>>, vector<128x128xbf16>
    %cst = arith.constant dense<0.000000e+00> : vector<128x128xf32>
    %2 = tpu.matmul %1, %0, %cst {dimension_numbers = #tpu.dot_dimension_numbers<[1], [0], [0], [1], [0, 0, 1, 1], [], []>} : vector<128x128xbf16>, vector<128x128xbf16>, vector<128x128xf32> -> vector<128x128xf32>
    %c0_3 = arith.constant 0 : index
    %c0_4 = arith.constant 0 : index
    %3 = vector.load %arg4[%c0_3, %c0_4] : memref<128x128xf32, #tpu.memory_space<vmem>>, vector<128x128xf32>
    %cst_5 = arith.constant dense<0.000000e+00> : vector<128x128xf32>
    %4 = tpu.matmul %2, %3, %cst_5 {dimension_numbers = #tpu.dot_dimension_numbers<[1], [0], [0], [1], [0, 0, 1, 1], [], []>} : vector<128x128xf32>, vector<128x128xf32>, vector<128x128xf32> -> vector<128x128xf32>
    %c0_6 = arith.constant 0 : index
    %c0_7 = arith.constant 0 : index
    %5 = vector.load %arg5[%c0_6, %c0_7] : memref<1x128xf32, #tpu.memory_space<vmem>>, vector<1x128xf32>
    %6 = vector.broadcast %5 : vector<1x128xf32> to vector<128x128xf32>
    %7 = arith.addf %4, %6 : vector<128x128xf32>
    %cst_8 = arith.constant 0.000000e+00 : f32
    %8 = vector.broadcast %cst_8 : f32 to vector<128x128xf32>
    %9 = arith.cmpf ogt, %7, %8 : vector<128x128xf32>
    %cst_9 = arith.constant 2.000000e-01 : f32
    %10 = vector.broadcast %cst_9 : f32 to vector<128x128xf32>
    %11 = arith.mulf %10, %7 : vector<128x128xf32>
    %12 = arith.select %9, %7, %11 : vector<128x128xi1>, vector<128x128xf32>
    %13 = arith.truncf %12 : vector<128x128xf32> to vector<128x128xbf16>
    %c0_10 = arith.constant 0 : index
    %c0_11 = arith.constant 0 : index
    %14 = vector.load %arg6[%c0_10, %c0_11] : memref<128x128xbf16, #tpu.memory_space<vmem>>, vector<128x128xbf16>
    tpu.vector_store %arg6[%c0_10, %c0_11], %13 {strides = array<i32>} : memref<128x128xbf16, #tpu.memory_space<vmem>>, vector<128x128xbf16>,
    return
  }
  func.func @transform_0(%arg0: i32, %arg1: i32) -> (i32, i32) {
    %c0_i32 = arith.constant 0 : i32
    return %arg0, %arg1 : i32, i32
  }
  func.func @transform_1(%arg0: i32, %arg1: i32) -> (i32, i32) {
    %c0_i32 = arith.constant 0 : i32
    %c0_i32_0 = arith.constant 0 : i32
    %c0_i32_1 = arith.constant 0 : i32
    return %c0_i32, %c0_i32_0 : i32, i32
  }
  func.func @transform_2(%arg0: i32, %arg1: i32) -> (i32, i32) {
    %c0_i32 = arith.constant 0 : i32
    %c0_i32_0 = arith.constant 0 : i32
    %c0_i32_1 = arith.constant 0 : i32
    return %c0_i32, %c0_i32_0 : i32, i32
  }
  func.func @transform_3(%arg0: i32, %arg1: i32) -> (i32, i32) {
    %c0_i32 = arith.constant 0 : i32
    %c0_i32_0 = arith.constant 0 : i32
    %c0_i32_1 = arith.constant 0 : i32
    return %c0_i32, %c0_i32_0 : i32, i32
  }
  func.func @transform_4(%arg0: i32, %arg1: i32) -> (i32, i32) {
    %c0_i32 = arith.constant 0 : i32
    %c0_i32_0 = arith.constant 0 : i32
    return %arg0, %c0_i32 : i32, i32
  }
}

</mosaic_0001>

<bundles_post_ra>
// kernel: tpu_custom_call.1
= control target key start
LH: loop header
LB: loop body
LE: loop exit
PB: predicated region body
PF: predicated region fallthrough
CT: control target
= control target key end

     0   :  { %9 = vsyncpa [#allocation3], 0  ;;  %s1016_s0 = inlined_call_operand.hbm [shape: bf16[128,128], index: 0, kind: input, shape index: {}]   ;;  %s1017_s1 = inlined_call_operand.hbm [shape: bf16[128,128], index: 1, kind: input, shape index: {}]   ;;  %s1018_s2 = inlined_call_operand.hbm [shape: f32[128,128], index: 2, kind: input, shape index: {}]   ;;  %s1019_s3 = inlined_call_operand.vmem [shape: f32[1,128], index: 3, kind: input, shape index: {}]   ;;  %s1020_s4 = inlined_call_operand.hbm [shape: bf16[128,128], index: 4, kind: output, shape index: {}]  }
   0x1   :  { %10 = vsyncpa [#allocation6], 0 }
   0x2   :  { %11 = vsyncpa [#allocation4], 0  ;;  %s941_s15 = smov [#allocation5]   ;;  %s942_s17 = smov [#allocation2]  }
   0x3   :  { %s29_s16 = sshll.u32 %s941_s15, 4  ;;  %s17_s18 = sshll.u32 %s942_s17, 4  ;;  %s30_s16 = int_to_ptr.vmem [resolvable:$true] %s29_s16  ;;  %s18_s18 = int_to_ptr.vmem [resolvable:$true] %s17_s18 }
   0x4   :  { %s863_s19 = scalar_lea.vmem %s30_s16, 1024  ;;  %p868_p1 = scmp.lt.s32.totalorder %s30_s16, %s30_s16 }
   0x5   :  { %p864_p0 = scmp.ne.s32.totalorder %s30_s16, %s863_s19  ;;  %p869_p2 = scmp.lt.s32.totalorder %s863_s19, %s863_s19 }
   0x7   :  { %p870_p3 = por %p869_p2, %p868_p1 }
   0x9   :  { %p871_p4 = pnand %p870_p3, %p864_p0 }
   0xb   :  { %874 = shalt.err (!%p871_p4)
}
   0xc   :  { %s943_s20 = smov 64   ;;  %s944_s21 = smov 4  }
   0xd   :  { %35 = dma.hbm_to_vmem [thread:$0]  %s1017_s1, 1024, %s30_s16, [#allocation6], %s943_s20, %s943_s20, %s944_s21  }
   0xe   :  { %s883_s24 = scalar_lea.vmem %s18_s18, 1024  ;;  %p888_p6 = scmp.lt.s32.totalorder %s18_s18, %s18_s18 }
   0xf   :  { %p884_p5 = scmp.ne.s32.totalorder %s18_s18, %s883_s24  ;;  %p889_p7 = scmp.lt.s32.totalorder %s883_s24, %s883_s24 }
  0x11   :  { %p890_p8 = por %p889_p7, %p888_p6 }
  0x13   :  { %p891_p9 = pnand %p890_p8, %p884_p5 }
  0x15   :  { %894 = shalt.err (!%p891_p9)
}
  0x16   :  { %23 = dma.hbm_to_vmem [thread:$0]  %s1016_s0, 1024, %s18_s18, [#allocation3], %s943_s20, %s943_s20, %s944_s21  }
  0x17   :  { %s945_s27 = smov [#allocation7]  }
  0x18   :  { %s41_s28 = sshll.u32 %s945_s27, 4  ;;  %s42_s28 = int_to_ptr.vmem [resolvable:$true] %s41_s28 }
  0x19   :  { %s903_s29 = scalar_lea.vmem %s42_s28, 2048  ;;  %p908_p11 = scmp.lt.s32.totalorder %s42_s28, %s42_s28 }
  0x1a   :  { %p904_p10 = scmp.ne.s32.totalorder %s42_s28, %s903_s29  ;;  %p909_p12 = scmp.lt.s32.totalorder %s903_s29, %s903_s29 }
  0x1c   :  { %p910_p13 = por %p909_p12, %p908_p11 }
  0x1e   :  { %p911_p0 = pnand %p910_p13, %p904_p10 }
  0x20   :  { %914 = shalt.err (!%p911_p0)
}
  0x21   :  { %s946_s1 = smov 128   ;;  %s947_s30 = smov 8  }
  0x22   :  { %47 = dma.hbm_to_vmem [thread:$0]  %s1018_s2, 2048, %s42_s28, [#allocation6], %s946_s1, %s946_s1, %s947_s30  }
  0x23   :  { %935 = dma.done.wait [#allocation3], 1024  }
  0x24   :  { %936 = vsyncadd [#allocation3], 4294966272 }
  0x25   :  { %937 = dma.done.wait [#allocation6], 3072  }
  0x26   :  { %938 = vsyncadd [#allocation6], 4294964224  ;;  %v839_v0 = vld [vmem:[#allocation5 + $0x38] sm:$0xff]   ;;  %v840_v1 = vld [vmem:[#allocation5 + $0x30] sm:$0xff]  }
  0x27   :  { %743 = vmatprep.subr.bf16.mxu0 %v839_v0  ;;  %v841_v2 = vld [vmem:[#allocation5 + $0x28] sm:$0xff]   ;;  %v842_v3 = vld [vmem:[#allocation5 + $0x20] sm:$0xff]   ;;  %v843_v5 = vld [vmem:[#allocation5 + $0x18] sm:$0xff]  }
  0x28   :  { %744 = vmatpush3.bf16.msra.mxu0 %v839_v0  ;;  %v847_v4 = vld [vmem:[#allocation2] sm:$0xff]   ;;  %v844_v6 = vld [vmem:[#allocation5 + $0x10] sm:$0xff]   ;;  %v300_v7 = vld [vmem:[#allocation7 + $0x78] sm:$0xff] }
  0x29   :  { %745 = vmatprep.subr.bf16.mxu0 %v840_v1  ;;  %759 = vmatprep.mubr.bf16.mxu0 %v847_v4  ;;  %v299_v8 = vld [vmem:[#allocation7 + $0x70] sm:$0xff]  ;;  %v298_v9 = vld [vmem:[#allocation7 + $0x68] sm:$0xff]  ;;  %v297_v11 = vld [vmem:[#allocation7 + $0x60] sm:$0xff] }
  0x2a   :  { %775 = vmatprep.subr.mxu1 %v300_v7  ;;  %v845_v10 = vld [vmem:[#allocation5 + $0x8] sm:$0xff]   ;;  %v296_v12 = vld [vmem:[#allocation7 + $0x58] sm:$0xff]  ;;  %v846_v13 = vld [vmem:[#allocation5] sm:$0xff]  }
  0x2b   :  { %776 = vmatpush3.msra.mxu1 %v300_v7  ;;  %v295_v14 = vld [vmem:[#allocation7 + $0x50] sm:$0xff]  ;;  %v294_v15 = vld [vmem:[#allocation7 + $0x48] sm:$0xff]  ;;  %v293_v16 = vld [vmem:[#allocation7 + $0x40] sm:$0xff] }
  0x2c   :  { %746 = vmatpush3.bf16.msra.mxu0 %v840_v1  ;;  %777 = vmatprep.subr.mxu1 %v299_v8  ;;  %v848_v17 = vld [vmem:[#allocation2 + $0x8] sm:$0xff]   ;;  %v292_v18 = vld [vmem:[#allocation7 + $0x38] sm:$0xff]  ;;  %v849_v19 = vld [vmem:[#allocation2 + $0x10] sm:$0xff]  }
  0x2d   :  { %747 = vmatprep.subr.bf16.mxu0 %v841_v2  ;;  %778 = vmatpush3.msra.mxu1 %v299_v8  ;;  %v291_v20 = vld [vmem:[#allocation7 + $0x30] sm:$0xff]  ;;  %v290_v21 = vld [vmem:[#allocation7 + $0x28] sm:$0xff]  ;;  %v289_v22 = vld [vmem:[#allocation7 + $0x20] sm:$0xff] }
  0x2e   :  { %779 = vmatprep.subr.mxu1 %v298_v9  ;;  %v850_v23 = vld [vmem:[#allocation2 + $0x18] sm:$0xff]   ;;  %v851_v25 = vld [vmem:[#allocation2 + $0x20] sm:$0xff]   ;;  %v852_v26 = vld [vmem:[#allocation2 + $0x28] sm:$0xff]  }
  0x2f   :  { %780 = vmatpush3.msra.mxu1 %v298_v9  ;;  %v288_v24 = vld [vmem:[#allocation7 + $0x18] sm:$0xff]  ;;  %v853_v27 = vld [vmem:[#allocation2 + $0x30] sm:$0xff]   ;;  %v286_v30 = vld [vmem:[#allocation7 + $0x8] sm:$0xff] }
  0x30   :  { %748 = vmatpush3.bf16.msra.mxu0 %v841_v2  ;;  %781 = vmatprep.subr.mxu1 %v297_v11  ;;  %v854_v28 = vld [vmem:[#allocation2 + $0x38] sm:$0xff]   ;;  %v287_v29 = vld [vmem:[#allocation7 + $0x10] sm:$0xff]  ;;  %v285_v31 = vld [vmem:[#allocation7] sm:$0xff] }
  0x31   :  { %749 = vmatprep.subr.bf16.mxu0 %v842_v3  ;;  %782 = vmatpush3.msra.mxu1 %v297_v11  ;;  %v992_v48 = vld [vmem:[%s1019_s3] ss:$0 sm:$0xff]  ;;  %s948_s3 = smov [#allocation8]  }
  0x32   :  { %783 = vmatprep.subr.mxu1 %v296_v12  ;;  %s586_s7 = sshll.u32 %s948_s3, 4  ;;  %s587_s7 = int_to_ptr.vmem [resolvable:$true] %s586_s7 }
  0x33   :  { %784 = vmatpush3.msra.mxu1 %v296_v12  ;;  %s915_s8 = scalar_lea.vmem %s587_s7, 1024  ;;  %p920_p2 = scmp.lt.s32.totalorder %s587_s7, %s587_s7 }
  0x34   :  { %750 = vmatpush3.bf16.msra.mxu0 %v842_v3  ;;  %785 = vmatprep.subr.mxu1 %v295_v14  ;;  %p916_p1 = scmp.ne.s32.totalorder %s587_s7, %s915_s8  ;;  %p921_p3 = scmp.lt.s32.totalorder %s915_s8, %s915_s8 }
  0x35   :  { %751 = vmatprep.subr.bf16.mxu0 %v843_v5  ;;  %786 = vmatpush3.msra.mxu1 %v295_v14 }
  0x36   :  { %787 = vmatprep.subr.mxu1 %v294_v15  ;;  %p922_p4 = por %p921_p3, %p920_p2 }
  0x37   :  { %788 = vmatpush3.msra.mxu1 %v294_v15 }
  0x38   :  { %752 = vmatpush3.bf16.msra.mxu0 %v843_v5  ;;  %789 = vmatprep.subr.mxu1 %v293_v16  ;;  %p923_p5 = pnand %p922_p4, %p916_p1 }
  0x39   :  { %753 = vmatprep.subr.bf16.mxu0 %v844_v6  ;;  %790 = vmatpush3.msra.mxu1 %v293_v16 }
  0x3a   :  { %791 = vmatprep.subr.mxu1 %v292_v18 }
  0x3b   :  { %792 = vmatpush3.msra.mxu1 %v292_v18 }
  0x3c   :  { %754 = vmatpush3.bf16.msra.mxu0 %v844_v6  ;;  %793 = vmatprep.subr.mxu1 %v291_v20 }
  0x3d   :  { %755 = vmatprep.subr.bf16.mxu0 %v845_v10  ;;  %794 = vmatpush3.msra.mxu1 %v291_v20 }
  0x3e   :  { %795 = vmatprep.subr.mxu1 %v290_v21 }
  0x3f   :  { %796 = vmatpush3.msra.mxu1 %v290_v21 }
  0x40   :  { %756 = vmatpush3.bf16.msra.mxu0 %v845_v10  ;;  %797 = vmatprep.subr.mxu1 %v289_v22 }
  0x41   :  { %757 = vmatprep.subr.bf16.mxu0 %v846_v13  ;;  %798 = vmatpush3.msra.mxu1 %v289_v22 }
  0x42   :  { %799 = vmatprep.subr.mxu1 %v288_v24 }
  0x43   :  { %800 = vmatpush3.msra.mxu1 %v288_v24 }
  0x44   :  { %758 = vmatpush3.bf16.msra.mxu0 %v846_v13  ;;  %801 = vmatprep.subr.mxu1 %v287_v29 }
  0x45   :  { %802 = vmatpush3.msra.mxu1 %v287_v29 }
  0x46   :  { %803 = vmatprep.subr.mxu1 %v286_v30 }
  0x47   :  { %760 = vmatmul.mubr.bf16.vlgmr.msra.gmra.mxu0 %v848_v17  ;;  %804 = vmatpush3.msra.mxu1 %v286_v30 }
  0x48   :  { %763 = vmatprep.mubr.bf16.mxu0 %v849_v19  ;;  %805 = vmatprep.subr.mxu1 %v285_v31 }
  0x49   :  { %806 = vmatpush3.msra.mxu1 %v285_v31 }
  0x4f   :  { %764 = vmatmul.mubr.bf16.gmra.mxu0 %v850_v23 }
  0x50   :  { %767 = vmatprep.mubr.bf16.mxu0 %v851_v25 }
  0x57   :  { %768 = vmatmul.mubr.bf16.gmra.mxu0 %v852_v26 }
  0x58   :  { %771 = vmatprep.mubr.bf16.mxu0 %v853_v27 }
  0x5f   :  { %772 = vmatmul.mubr.bf16.gmra.mxu0 %v854_v28 }
 0x107   :  { %v761_v32 = vpop.f32.mrf.mxu0 }
 0x109   :  { %v222_v33 = vpop.f32.mrf.mxu0 }
 0x10a   :  { %807 = vmatprep.mubr.f32.mxu1 %v222_v33 }
 0x10b   :  { %v762_v34 = vpop.f32.mrf.mxu0 }
 0x10d   :  { %v225_v35 = vpop.f32.mrf.mxu0 }
 0x10e   :  { %808 = vmatmul.mubr.f32.vlgmr.msra.gmra.mxu1 %v225_v35 }
 0x10f   :  { %v765_v36 = vpop.f32.mrf.mxu0  ;;  %810 = vmatprep.mubr.f32.mxu1 %v761_v32 }
 0x111   :  { %v238_v37 = vpop.f32.mrf.mxu0 }
 0x112   :  { %811 = vmatmul.mubr.f32.gmra.mxu1 %v762_v34 }
 0x113   :  { %v766_v38 = vpop.f32.mrf.mxu0  ;;  %813 = vmatprep.mubr.f32.mxu1 %v238_v37 }
 0x115   :  { %v241_v39 = vpop.f32.mrf.mxu0 }
 0x116   :  { %814 = vmatmul.mubr.f32.gmra.mxu1 %v241_v39 }
 0x117   :  { %v769_v40 = vpop.f32.mrf.mxu0  ;;  %816 = vmatprep.mubr.f32.mxu1 %v765_v36 }
 0x119   :  { %v254_v41 = vpop.f32.mrf.mxu0 }
 0x11a   :  { %817 = vmatmul.mubr.f32.gmra.mxu1 %v766_v38 }
 0x11b   :  { %v770_v42 = vpop.f32.mrf.mxu0  ;;  %819 = vmatprep.mubr.f32.mxu1 %v254_v41 }
 0x11d   :  { %v257_v43 = vpop.f32.mrf.mxu0 }
 0x11e   :  { %820 = vmatmul.mubr.f32.gmra.mxu1 %v257_v43 }
 0x11f   :  { %v773_v44 = vpop.f32.mrf.mxu0  ;;  %822 = vmatprep.mubr.f32.mxu1 %v769_v40 }
 0x121   :  { %v270_v45 = vpop.f32.mrf.mxu0 }
 0x122   :  { %823 = vmatmul.mubr.f32.gmra.mxu1 %v770_v42 }
 0x123   :  { %v774_v46 = vpop.f32.mrf.mxu0  ;;  %825 = vmatprep.mubr.f32.mxu1 %v270_v45 }
 0x125   :  { %v273_v47 = vpop.f32.mrf.mxu0 }
 0x126   :  { %826 = vmatmul.mubr.f32.gmra.mxu1 %v273_v47 }
 0x127   :  { %828 = vmatprep.mubr.f32.mxu1 %v773_v44 }
 0x12a   :  { %829 = vmatmul.mubr.f32.gmra.mxu1 %v774_v46 }
 0x1ce   :  { %v809_v49 = vpop.f32.mrf.mxu1 }
 0x1cf   :  { %v380_v50 = vadd.f32 %v809_v49, %v992_v48 }
 0x1d0   :  { %v374_v51 = vpop.f32.mrf.mxu1 }
 0x1d1   :  { %v470_v52 = vmul.f32 0.2, %v380_v50  ;;  %v375_v53 = vadd.f32 %v992_v48, %v374_v51  ;;  %vm454_vm0 = vcmp.gt.f32.partialorder %v380_v50, 0.0 }
 0x1d2   :  { %v812_v54 = vpop.f32.mrf.mxu1 }
 0x1d3   :  { %vm453_vm1 = vcmp.gt.f32.partialorder %v375_v53, 0.0  ;;  %v469_v55 = vmul.f32 0.2, %v375_v53  ;;  %v390_v56 = vadd.f32 %v812_v54, %v992_v48  ;;  %v486_v58 = vsel %vm454_vm0, %v380_v50, %v470_v52 }
 0x1d4   :  { %v384_v57 = vpop.f32.mrf.mxu1 }
 0x1d5   :  { %v485_v59 = vsel %vm453_vm1, %v375_v53, %v469_v55  ;;  %v472_v60 = vmul.f32 0.2, %v390_v56  ;;  %v385_v61 = vadd.f32 %v992_v48, %v384_v57  ;;  %vm456_vm2 = vcmp.gt.f32.partialorder %v390_v56, 0.0 }
 0x1d6   :  { %v651_v62 = vpack.c.bf16 %v486_v58, %v485_v59  ;;  %v815_v63 = vpop.f32.mrf.mxu1 }
 0x1d7   :  { %vm455_vm3 = vcmp.gt.f32.partialorder %v385_v61, 0.0  ;;  %v471_v0 = vmul.f32 0.2, %v385_v61  ;;  %v400_v1 = vadd.f32 %v815_v63, %v992_v48  ;;  %v488_v3 = vsel %vm456_vm2, %v390_v56, %v472_v60 }
 0x1d8   :  { %652 = vst [vmem:[#allocation8] sm:$0xff] %v651_v62   ;;  %v394_v2 = vpop.f32.mrf.mxu1 }
 0x1d9   :  { %v487_v4 = vsel %vm455_vm3, %v385_v61, %v471_v0  ;;  %v474_v5 = vmul.f32 0.2, %v400_v1  ;;  %v395_v6 = vadd.f32 %v992_v48, %v394_v2  ;;  %vm458_vm4 = vcmp.gt.f32.partialorder %v400_v1, 0.0 }
 0x1da   :  { %v656_v7 = vpack.c.bf16 %v488_v3, %v487_v4  ;;  %v818_v8 = vpop.f32.mrf.mxu1 }
 0x1db   :  { %vm457_vm5 = vcmp.gt.f32.partialorder %v395_v6, 0.0  ;;  %v473_v9 = vmul.f32 0.2, %v395_v6  ;;  %v410_v10 = vadd.f32 %v818_v8, %v992_v48  ;;  %v490_v12 = vsel %vm458_vm4, %v400_v1, %v474_v5 }
 0x1dc   :  { %688 = vst [vmem:[#allocation8 + $0x8] sm:$0xff] %v656_v7   ;;  %v404_v11 = vpop.f32.mrf.mxu1 }
 0x1dd   :  { %v489_v13 = vsel %vm457_vm5, %v395_v6, %v473_v9  ;;  %v476_v14 = vmul.f32 0.2, %v410_v10  ;;  %v405_v15 = vadd.f32 %v992_v48, %v404_v11  ;;  %vm460_vm6 = vcmp.gt.f32.partialorder %v410_v10, 0.0 }
 0x1de   :  { %v661_v16 = vpack.c.bf16 %v490_v12, %v489_v13  ;;  %v821_v17 = vpop.f32.mrf.mxu1 }
 0x1df   :  { %vm459_vm7 = vcmp.gt.f32.partialorder %v405_v15, 0.0  ;;  %v475_v18 = vmul.f32 0.2, %v405_v15  ;;  %v420_v19 = vadd.f32 %v821_v17, %v992_v48  ;;  %v492_v21 = vsel %vm460_vm6, %v410_v10, %v476_v14 }
 0x1e0   :  { %689 = vst [vmem:[#allocation8 + $0x10] sm:$0xff] %v661_v16   ;;  %v414_v20 = vpop.f32.mrf.mxu1 }
 0x1e1   :  { %v491_v22 = vsel %vm459_vm7, %v405_v15, %v475_v18  ;;  %v478_v23 = vmul.f32 0.2, %v420_v19  ;;  %v415_v24 = vadd.f32 %v992_v48, %v414_v20  ;;  %vm462_vm8 = vcmp.gt.f32.partialorder %v420_v19, 0.0 }
 0x1e2   :  { %v666_v25 = vpack.c.bf16 %v492_v21, %v491_v22  ;;  %v824_v26 = vpop.f32.mrf.mxu1 }
 0x1e3   :  { %vm461_vm9 = vcmp.gt.f32.partialorder %v415_v24, 0.0  ;;  %v477_v27 = vmul.f32 0.2, %v415_v24  ;;  %v430_v28 = vadd.f32 %v824_v26, %v992_v48  ;;  %v494_v30 = vsel %vm462_vm8, %v420_v19, %v478_v23 }
 0x1e4   :  { %690 = vst [vmem:[#allocation8 + $0x18] sm:$0xff] %v666_v25   ;;  %v424_v29 = vpop.f32.mrf.mxu1 }
 0x1e5   :  { %v493_v31 = vsel %vm461_vm9, %v415_v24, %v477_v27  ;;  %v480_v32 = vmul.f32 0.2, %v430_v28  ;;  %v425_v33 = vadd.f32 %v992_v48, %v424_v29  ;;  %vm464_vm10 = vcmp.gt.f32.partialorder %v430_v28, 0.0 }
 0x1e6   :  { %v671_v34 = vpack.c.bf16 %v494_v30, %v493_v31  ;;  %v827_v35 = vpop.f32.mrf.mxu1 }
 0x1e7   :  { %vm463_vm11 = vcmp.gt.f32.partialorder %v425_v33, 0.0  ;;  %v479_v36 = vmul.f32 0.2, %v425_v33  ;;  %v440_v37 = vadd.f32 %v827_v35, %v992_v48  ;;  %v496_v39 = vsel %vm464_vm10, %v430_v28, %v480_v32 }
 0x1e8   :  { %691 = vst [vmem:[#allocation8 + $0x20] sm:$0xff] %v671_v34   ;;  %v434_v38 = vpop.f32.mrf.mxu1 }
 0x1e9   :  { %v495_v40 = vsel %vm463_vm11, %v425_v33, %v479_v36  ;;  %v482_v41 = vmul.f32 0.2, %v440_v37  ;;  %v435_v42 = vadd.f32 %v992_v48, %v434_v38  ;;  %vm466_vm12 = vcmp.gt.f32.partialorder %v440_v37, 0.0 }
 0x1ea   :  { %v676_v43 = vpack.c.bf16 %v496_v39, %v495_v40  ;;  %v830_v44 = vpop.f32.mrf.mxu1 }
 0x1eb   :  { %vm465_vm13 = vcmp.gt.f32.partialorder %v435_v42, 0.0  ;;  %v481_v45 = vmul.f32 0.2, %v435_v42  ;;  %v450_v46 = vadd.f32 %v830_v44, %v992_v48  ;;  %v498_v49 = vsel %vm466_vm12, %v440_v37, %v482_v41 }
 0x1ec   :  { %692 = vst [vmem:[#allocation8 + $0x28] sm:$0xff] %v676_v43   ;;  %v444_v47 = vpop.f32.mrf.mxu1 }
 0x1ed   :  { %v497_v50 = vsel %vm465_vm13, %v435_v42, %v481_v45  ;;  %v484_v51 = vmul.f32 0.2, %v450_v46  ;;  %v445_v52 = vadd.f32 %v992_v48, %v444_v47  ;;  %vm468_vm14 = vcmp.gt.f32.partialorder %v450_v46, 0.0 }
 0x1ee   :  { %v681_v53 = vpack.c.bf16 %v498_v49, %v497_v50 }
 0x1ef   :  { %vm467_vm15 = vcmp.gt.f32.partialorder %v445_v52, 0.0  ;;  %v483_v54 = vmul.f32 0.2, %v445_v52  ;;  %v500_v55 = vsel %vm468_vm14, %v450_v46, %v484_v51 }
 0x1f0   :  { %693 = vst [vmem:[#allocation8 + $0x30] sm:$0xff] %v681_v53  }
 0x1f1   :  { %v499_v56 = vsel %vm467_vm15, %v445_v52, %v483_v54 }
 0x1f2   :  { %v686_v57 = vpack.c.bf16 %v500_v55, %v499_v56 }
 0x1f4   :  { %694 = vst [vmem:[#allocation8 + $0x38] sm:$0xff] %v686_v57  }
 0x1f5   :  { %926 = shalt.err (!%p923_p5)
}
 0x1f6   :  { %592 = dma.vmem_to_hbm [thread:$0]  %s587_s7, 1024, %s1020_s4, [#allocation4], %s943_s20, %s943_s20, %s944_s21  }
 0x1f7   :  { %939 = dma.done.wait [#allocation4], 1024  }
 0x1f8   :  { %940 = vsyncadd [#allocation4], 4294966272 }
 0x1f9   :  { %596 = vsyncpa [#allocation3], 1 }
 0x1fa   :  { %597 = vsyncpa [#allocation6], 1 }
 0x1fb   :  { %598 = vsyncpa [#allocation4], 1 }

</bundles_post_ra>
